<compile_context>
chip_gen: v7x
topology: tpu7x:2x2x1
jax: 0.10.0
libtpu: 0.0.40
codegen_flags: <defaults>
</compile_context>

<pallas_src>
import math
import functools

import jax
import jax.numpy as jnp
from jax.experimental import pallas as pl
from jax.experimental.pallas import tpu as pltpu


# ---------------------------------------------------------------------------
# Kernels
# ---------------------------------------------------------------------------

def _phi_blend_store(cosine_raw, t, o_ref, *, cos_m, sin_m, th, mm, scale,
                     easy_margin):
    """Shared AAM math: clamp -> phi -> blend with targets -> scaled store."""
    cosine = jnp.clip(cosine_raw, -1.0 + 1e-07, 1.0 - 1e-07)
    sine = jnp.sqrt(1.0 - cosine * cosine)
    phi = cosine * cos_m - sine * sin_m
    if easy_margin:
        phi = jnp.where(cosine > 0.0, phi, cosine)
    else:
        phi = jnp.where(cosine > th, phi, cosine - mm)
    # targets*phi + (1-targets)*cosine == cosine + targets*(phi - cosine)
    o_ref[...] = (scale * (cosine + t * (phi - cosine))).astype(o_ref.dtype)


def _aam_dense_kernel(out_ref, tgt_ref, o_ref, *, cos_m, sin_m, th, mm, scale,
                      easy_margin):
    """Soft-target path: dense [block_n, block_c] targets tile."""
    cosine = out_ref[...].astype(jnp.float32)
    t = tgt_ref[...].astype(jnp.float32)
    _phi_blend_store(cosine, t, o_ref, cos_m=cos_m, sin_m=sin_m, th=th, mm=mm,
                     scale=scale, easy_margin=easy_margin)


def _aam_label_kernel(out_ref, lab_ref, o_ref, *, cos_m, sin_m, th, mm, scale,
                      easy_margin, two_d):
    """One-hot fast path: per-row int32 label, one-hot synthesized in-kernel."""
    cosine = out_ref[...].astype(jnp.float32)
    bn, bc = cosine.shape
    col_block = pl.program_id(1) if two_d else 0
    col = jax.lax.broadcasted_iota(jnp.int32, (bn, bc), 1) + col_block * bc
    # lab_ref is [block_n, 1] int32; broadcast compare across lanes.
    t = (col == lab_ref[...]).astype(jnp.float32)
    _phi_blend_store(cosine, t, o_ref, cos_m=cos_m, sin_m=sin_m, th=th, mm=mm,
                     scale=scale, easy_margin=easy_margin)


# ---------------------------------------------------------------------------
# Block-size selection
# ---------------------------------------------------------------------------

_LANE_CAP = 4096  # max class-dim block width (multiple of 128)


def _is_v7x():
    try:
        return "v7" in jax.devices()[0].device_kind.lower()
    except Exception:
        return False


def _choose_blocks(N, C, block_n, block_c):
    """(8,128)-legal, lane-dense blocks of ~2 MiB (v5e/v6e) / ~4 MiB (v7x)."""
    v7 = _is_v7x()
    target_bytes = (4 if v7 else 2) * 1024 * 1024  # per f32 stream per block

    if block_c is None:
        # Full class dim when small; otherwise a lane-dense multiple of 128
        # (Pallas masks the ragged tail block), so VMEM stays bounded for
        # very large / non-multiple-of-128 C.
        block_c = C if C <= _LANE_CAP else _LANE_CAP
    else:
        block_c = min(int(block_c), C)
        if block_c < C:
            block_c = max(128, (block_c // 128) * 128)

    if block_n is None:
        rows = target_bytes // max(block_c * 4, 1)
        block_n = min(max(8, (rows // 8) * 8), N)
        # v7x has 2 TensorCores: make sure a "parallel" axis has >= 2 blocks.
        if v7 and pl.cdiv(N, block_n) * pl.cdiv(C, block_c) < 2 and N >= 16:
            block_n = max(8, ((N // 2) // 8) * 8)
    else:
        block_n = min(int(block_n), N)
        if block_n < N:
            block_n = max(8, (block_n // 8) * 8)

    return block_n, block_c


# ---------------------------------------------------------------------------
# Wrapper
# ---------------------------------------------------------------------------

def additive_angular_margin(outputs, targets=None, *, labels=None, margin=0.0,
                            scale=1.0, easy_margin=False,
                            out_dtype=jnp.float32, block_n=None, block_c=None):
    """AdditiveAngularMargin forward as a Pallas TPU kernel.

    outputs: [N, C] cosine similarities (any float dtype; upcast in-kernel).
    Exactly one of:
      targets: [N, C] (soft) targets, streamed densely.
      labels:  [N] int class indices -> one-hot synthesized in-kernel
               (saves the dense targets HBM stream; preferred for one-hot).
    out_dtype: jnp.float32 (default, matches PyTorch) or e.g. jnp.bfloat16 to
               halve the writeback bytes (opt-in).
    """
    assert outputs.ndim == 2
    N, C = outputs.shape
    assert (targets is None) != (labels is None), \
        "pass exactly one of `targets` or `labels`"

    cos_m = math.cos(margin)
    sin_m = math.sin(margin)
    th = math.cos(math.pi - margin)
    mm = math.sin(math.pi - margin) * margin

    block_n, block_c = _choose_blocks(N, C, block_n, block_c)
    two_d = block_c < C

    if two_d:
        grid = (pl.cdiv(N, block_n), pl.cdiv(C, block_c))
        big_map = lambda i, j: (i, j)
        lab_map = lambda i, j: (i, 0)
        semantics = ("parallel", "parallel")
    else:
        # Degenerate class axis -> collapse to a 1-D grid over row blocks.
        grid = (pl.cdiv(N, block_n),)
        big_map = lambda i: (i, 0)
        lab_map = lambda i: (i, 0)
        semantics = ("parallel",)

    base = dict(cos_m=cos_m, sin_m=sin_m, th=th, mm=mm, scale=float(scale),
                easy_margin=easy_margin)

    if labels is not None:
        labels2d = labels.reshape(N, 1).astype(jnp.int32)
        kernel = functools.partial(_aam_label_kernel, two_d=two_d, **base)
        in_specs = [pl.BlockSpec((block_n, block_c), big_map),
                    pl.BlockSpec((block_n, 1), lab_map)]
        operands = (outputs, labels2d)
        in_bytes = outputs.size * outputs.dtype.itemsize + N * 4
    else:
        assert targets.shape == (N, C)
        kernel = functools.partial(_aam_dense_kernel, **base)
        in_specs = [pl.BlockSpec((block_n, block_c), big_map),
                    pl.BlockSpec((block_n, block_c), big_map)]
        operands = (outputs, targets)
        in_bytes = (outputs.size * outputs.dtype.itemsize
                    + targets.size * targets.dtype.itemsize)

    out_bytes = N * C * jnp.dtype(out_dtype).itemsize
    cost = pl.CostEstimate(flops=10 * N * C,
                           transcendentals=N * C,
                           bytes_accessed=in_bytes + out_bytes)

    return pl.pallas_call(
        kernel,
        out_shape=jax.ShapeDtypeStruct((N, C), out_dtype),
        grid_spec=pltpu.PrefetchScalarGridSpec(
            num_scalar_prefetch=0,
            grid=grid,
            in_specs=in_specs,
            out_specs=pl.BlockSpec((block_n, block_c), big_map),
        ),
        compiler_params=pltpu.CompilerParams(dimension_semantics=semantics),
        cost_estimate=cost,
    )(*operands)


# ---------------------------------------------------------------------------
# Pure-JAX reference (mirrors the PyTorch module)
# ---------------------------------------------------------------------------

def _reference(outputs, targets, *, margin=0.0, scale=1.0, easy_margin=False):
    cos_m = math.cos(margin)
    sin_m = math.sin(margin)
    th = math.cos(math.pi - margin)
    mm = math.sin(math.pi - margin) * margin
    cosine = jnp.clip(outputs.astype(jnp.float32), -1 + 1e-07, 1 - 1e-07)
    sine = jnp.sqrt(1.0 - cosine ** 2)
    phi = cosine * cos_m - sine * sin_m
    if easy_margin:
        phi = jnp.where(cosine > 0, phi, cosine)
    else:
        phi = jnp.where(cosine > th, phi, cosine - mm)
    t = targets.astype(jnp.float32)
    return scale * (t * phi + (1.0 - t) * cosine)


if __name__ == "__main__":
    key = jax.random.PRNGKey(0)
    k1, k2 = jax.random.split(key)

    N, C = 16, 256  # batch x num_classes (small test shape)
    outputs = jnp.tanh(jax.random.normal(k1, (N, C), dtype=jnp.float32))
    labels = jax.random.randint(k2, (N,), 0, C, dtype=jnp.int32)
    targets = jax.nn.one_hot(labels, C, dtype=jnp.float32)
    margin, scale = 0.2, 30.0

    ref = _reference(outputs, targets, margin=margin, scale=scale)

    # 1) Dense soft-target path (f32 in / f32 out)
    pred = jax.block_until_ready(
        additive_angular_margin(outputs, targets, margin=margin, scale=scale))
    assert pred.shape == (N, C) and pred.dtype == jnp.float32
    assert jnp.allclose(pred, ref, atol=1e-5, rtol=1e-5)

    # 2) Label fast path (no dense targets stream)
    pred_lab = jax.block_until_ready(
        additive_angular_margin(outputs, labels=labels, margin=margin,
                                scale=scale))
    assert jnp.allclose(pred_lab, ref, atol=1e-5, rtol=1e-5)

    # 3) easy_margin variant
    ref_em = _reference(outputs, targets, margin=margin, scale=scale,
                        easy_margin=True)
    pred_em = jax.block_until_ready(
        additive_angular_margin(outputs, labels=labels, margin=margin,
                                scale=scale, easy_margin=True))
    assert jnp.allclose(pred_em, ref_em, atol=1e-5, rtol=1e-5)

    # 4) bf16 inputs streamed at half the HBM bytes, upcast inside the kernel
    outputs_bf16 = outputs.astype(jnp.bfloat16)
    ref_bf16 = _reference(outputs_bf16, targets, margin=margin, scale=scale)
    pred_bf16 = jax.block_until_ready(
        additive_angular_margin(outputs_bf16, labels=labels, margin=margin,
                                scale=scale))
    assert pred_bf16.dtype == jnp.float32
    assert jnp.allclose(pred_bf16, ref_bf16, atol=1e-5, rtol=1e-5)

    # 5) Opt-in bf16 writeback (halves output bytes; documented contract is f32)
    pred_o16 = jax.block_until_ready(
        additive_angular_margin(outputs, labels=labels, margin=margin,
                                scale=scale, out_dtype=jnp.bfloat16))
    assert pred_o16.dtype == jnp.bfloat16
    assert jnp.allclose(pred_o16.astype(jnp.float32), ref, atol=0.25, rtol=0.02)

    # 6) 2-D grid with a ragged (non-multiple-of-128) class dim + partial tail
    C2 = 200
    outs2 = jnp.tanh(jax.random.normal(k1, (N, C2), dtype=jnp.float32))
    labs2 = jax.random.randint(k2, (N,), 0, C2, dtype=jnp.int32)
    tgts2 = jax.nn.one_hot(labs2, C2, dtype=jnp.float32)
    ref2 = _reference(outs2, tgts2, margin=margin, scale=scale)
    pred2_lab = jax.block_until_ready(
        additive_angular_margin(outs2, labels=labs2, margin=margin, scale=scale,
                                block_n=8, block_c=128))
    assert jnp.allclose(pred2_lab, ref2, atol=1e-5, rtol=1e-5)
    pred2_dense = jax.block_until_ready(
        additive_angular_margin(outs2, tgts2, margin=margin, scale=scale,
                                block_n=8, block_c=128))
    assert jnp.allclose(pred2_dense, ref2, atol=1e-5, rtol=1e-5)

    print("KERNEL_OK")
</pallas_src>

<mosaic_0001>
module attributes {stable_mosaic.version = 11 : i64} {
  func.func @_aam_dense_kernel(%arg0: i32, %arg1: memref<16x256xf32, #tpu.memory_space<vmem>>, %arg2: memref<16x256xf32, #tpu.memory_space<vmem>>, %arg3: memref<16x256xf32, #tpu.memory_space<vmem>>) attributes {dimension_semantics = [#tpu.dimension_semantics<parallel>], iteration_bounds = array<i64: 1>, scalar_prefetch = 0 : i64, scratch_operands = 0 : i64, tpu.core_type = #tpu.core_type<tc>, window_params = [{transform_indices = @transform_0, window_bounds = array<i64: 16, 256>}, {transform_indices = @transform_1, window_bounds = array<i64: 16, 256>}, {transform_indices = @transform_2, window_bounds = array<i64: 16, 256>}]} {
    %c0 = arith.constant 0 : index
    %c0_0 = arith.constant 0 : index
    %0 = vector.load %arg1[%c0, %c0_0] : memref<16x256xf32, #tpu.memory_space<vmem>>, vector<16x256xf32>
    %c0_1 = arith.constant 0 : index
    %c0_2 = arith.constant 0 : index
    %1 = vector.load %arg2[%c0_1, %c0_2] : memref<16x256xf32, #tpu.memory_space<vmem>>, vector<16x256xf32>
    %cst = arith.constant -0.99999988 : f32
    %cst_3 = arith.constant 0.99999988 : f32
    %2 = vector.broadcast %cst : f32 to vector<16x256xf32>
    %3 = arith.maximumf %2, %0 : vector<16x256xf32>
    %4 = vector.broadcast %cst_3 : f32 to vector<16x256xf32>
    %5 = arith.minimumf %4, %3 : vector<16x256xf32>
    %6 = arith.mulf %5, %5 : vector<16x256xf32>
    %cst_4 = arith.constant 1.000000e+00 : f32
    %7 = vector.broadcast %cst_4 : f32 to vector<16x256xf32>
    %8 = arith.subf %7, %6 : vector<16x256xf32>
    %9 = math.sqrt %8 : vector<16x256xf32>
    %cst_5 = arith.constant 0.980066597 : f32
    %10 = vector.broadcast %cst_5 : f32 to vector<16x256xf32>
    %11 = arith.mulf %5, %10 : vector<16x256xf32>
    %cst_6 = arith.constant 0.198669329 : f32
    %12 = vector.broadcast %cst_6 : f32 to vector<16x256xf32>
    %13 = arith.mulf %9, %12 : vector<16x256xf32>
    %14 = arith.subf %11, %13 : vector<16x256xf32>
    %cst_7 = arith.constant -0.980066597 : f32
    %15 = vector.broadcast %cst_7 : f32 to vector<16x256xf32>
    %16 = arith.cmpf ogt, %5, %15 : vector<16x256xf32>
    %cst_8 = arith.constant 0.0397338644 : f32
    %17 = vector.broadcast %cst_8 : f32 to vector<16x256xf32>
    %18 = arith.subf %5, %17 : vector<16x256xf32>
    %19 = arith.select %16, %14, %18 : vector<16x256xi1>, vector<16x256xf32>
    %20 = arith.subf %19, %5 : vector<16x256xf32>
    %21 = arith.mulf %1, %20 : vector<16x256xf32>
    %22 = arith.addf %5, %21 : vector<16x256xf32>
    %cst_9 = arith.constant 3.000000e+01 : f32
    %23 = vector.broadcast %cst_9 : f32 to vector<16x256xf32>
    %24 = arith.mulf %23, %22 : vector<16x256xf32>
    %c0_10 = arith.constant 0 : index
    %c0_11 = arith.constant 0 : index
    %25 = vector.load %arg3[%c0_10, %c0_11] : memref<16x256xf32, #tpu.memory_space<vmem>>, vector<16x256xf32>
    tpu.vector_store %arg3[%c0_10, %c0_11], %24 {strides = array<i32>} : memref<16x256xf32, #tpu.memory_space<vmem>>, vector<16x256xf32>,
    return
  }
  func.func @transform_0(%arg0: i32) -> (i32, i32) {
    %c0_i32 = arith.constant 0 : i32
    %c0_i32_0 = arith.constant 0 : i32
    return %arg0, %c0_i32 : i32, i32
  }
  func.func @transform_1(%arg0: i32) -> (i32, i32) {
    %c0_i32 = arith.constant 0 : i32
    %c0_i32_0 = arith.constant 0 : i32
    return %arg0, %c0_i32 : i32, i32
  }
  func.func @transform_2(%arg0: i32) -> (i32, i32) {
    %c0_i32 = arith.constant 0 : i32
    %c0_i32_0 = arith.constant 0 : i32
    return %arg0, %c0_i32 : i32, i32
  }
}

</mosaic_0001>

<bundles_post_ra>
// kernel: tpu_custom_call.1
= control target key start
LH: loop header
LB: loop body
LE: loop exit
PB: predicated region body
PF: predicated region fallthrough
CT: control target
= control target key end

     0   :  { %7 = vsyncpa [#allocation3], 0  ;;  %s352_s0 = inlined_call_operand.hbm [shape: f32[16,256], index: 0, kind: input, shape index: {}]   ;;  %s353_s1 = inlined_call_operand.hbm [shape: f32[16,256], index: 1, kind: input, shape index: {}]   ;;  %s354_s2 = inlined_call_operand.hbm [shape: f32[16,256], index: 2, kind: output, shape index: {}]  }
   0x1   :  { %8 = vsyncpa [#allocation6], 0 }
   0x2   :  { %9 = vsyncpa [#allocation4], 0  ;;  %s247_s9 = smov [#allocation2]   ;;  %s175_s13 = scalar_lea.hbm %s352_s0, 512 }
   0x3   :  { %s15_s10 = sshll.u32 %s247_s9, 4  ;;  %p176_p0 = scmp.ne.s32.totalorder %s352_s0, %s175_s13  ;;  %s16_s10 = int_to_ptr.vmem [resolvable:$true] %s15_s10 }
   0x4   :  { %p179_p1 = scmp.lt.u32.totalorder %s175_s13, %s352_s0 }
   0x6   :  { %p181_p2 = pnand %p179_p1, %p176_p0 }
   0x8   :  { %184 = shalt.err (!%p181_p2)
}
   0x9   :  { %s185_s18 = scalar_lea.vmem %s16_s10, 512  ;;  %p190_p4 = scmp.lt.s32.totalorder %s16_s10, %s16_s10 }
   0xa   :  { %p186_p3 = scmp.ne.s32.totalorder %s16_s10, %s185_s18  ;;  %p191_p5 = scmp.lt.s32.totalorder %s185_s18, %s185_s18 }
   0xc   :  { %p192_p6 = por %p191_p5, %p190_p4 }
   0xe   :  { %p193_p7 = pnand %p192_p6, %p186_p3 }
  0x10   :  { %196 = shalt.err (!%p193_p7)
}
  0x11   :  { %s248_s19 = smov 256   ;;  %s249_s20 = smov 16  }
  0x12   :  { %21 = dma.hbm_to_vmem [thread:$0]  %s352_s0, 512, %s16_s10, [#allocation3], %s248_s19, %s248_s19, %s249_s20  }
  0x13   :  { %s250_s23 = smov [#allocation5]   ;;  %s197_s27 = scalar_lea.hbm %s353_s1, 512 }
  0x14   :  { %s27_s24 = sshll.u32 %s250_s23, 4  ;;  %p198_p8 = scmp.ne.s32.totalorder %s353_s1, %s197_s27  ;;  %s28_s24 = int_to_ptr.vmem [resolvable:$true] %s27_s24 }
  0x15   :  { %p201_p9 = scmp.lt.u32.totalorder %s197_s27, %s353_s1 }
  0x17   :  { %p203_p10 = pnand %p201_p9, %p198_p8 }
  0x19   :  { %206 = shalt.err (!%p203_p10)
}
  0x1a   :  { %s207_s4 = scalar_lea.vmem %s28_s24, 512  ;;  %p212_p12 = scmp.lt.s32.totalorder %s28_s24, %s28_s24 }
  0x1b   :  { %p208_p11 = scmp.ne.s32.totalorder %s28_s24, %s207_s4  ;;  %p213_p13 = scmp.lt.s32.totalorder %s207_s4, %s207_s4 }
  0x1d   :  { %p214_p0 = por %p213_p13, %p212_p12 }
  0x1f   :  { %p215_p1 = pnand %p214_p0, %p208_p11 }
  0x21   :  { %218 = shalt.err (!%p215_p1)
}
  0x22   :  { %33 = dma.hbm_to_vmem [thread:$0]  %s353_s1, 512, %s28_s24, [#allocation6], %s248_s19, %s248_s19, %s249_s20  }
  0x23   :  { %241 = dma.done.wait [#allocation3], 512  }
  0x24   :  { %242 = vsyncadd [#allocation3], 4294966784 }
  0x25   :  { %243 = dma.done.wait [#allocation6], 512  }
  0x26   :  { %244 = vsyncadd [#allocation6], 4294966784  ;;  %v40_v0 = vld [vmem:[#allocation2] sm:$0xff]  ;;  %v41_v1 = vld [vmem:[#allocation2 + $0x8] sm:$0xff]  ;;  %s251_s1 = smov [#allocation7]  }
  0x27   :  { %v297_v2 = vclamps-f32 %v40_v0, 0.9999999  ;;  %v299_v3 = vclamps-f32 %v41_v1, 0.9999999  ;;  %v42_v4 = vld [vmem:[#allocation2 + $0x10] sm:$0xff]  ;;  %v43_v7 = vld [vmem:[#allocation2 + $0x18] sm:$0xff] }
  0x28   :  { %v301_v5 = vclamps-f32 %v42_v4, 0.9999999  ;;  %v309_v12 = vclamps-f32 %v43_v7, 0.9999999  ;;  %v44_v40 = vld [vmem:[#allocation5] sm:$0xff]  ;;  %v45_v48 = vld [vmem:[#allocation5 + $0x8] sm:$0xff] }
  0x29   :  { %v56_v6 = vmul.f32 %v297_v2, %v297_v2  ;;  %v57_v8 = vmul.f32 %v299_v3, %v299_v3  ;;  %v92_v21 = vmul.f32 0.9800666, %v297_v2  ;;  %vm104_vm3 = vcmp.gt.f32.partialorder %v297_v2, -0.9800666  ;;  %v46_v59 = vld [vmem:[#allocation5 + $0x10] sm:$0xff]  ;;  %s141_s6 = sshll.u32 %s251_s1, 4  ;;  %s142_s6 = int_to_ptr.vmem [resolvable:$true] %s141_s6 }
  0x2a   :  { %v58_v10 = vmul.f32 %v301_v5, %v301_v5  ;;  %v59_v14 = vmul.f32 %v309_v12, %v309_v12  ;;  %v158_v24 = vadd.f32 -0.039733864, %v297_v2  ;;  %v93_v25 = vmul.f32 0.9800666, %v299_v3  ;;  %s219_s7 = scalar_lea.vmem %s142_s6, 512  ;;  %p224_p3 = scmp.lt.s32.totalorder %s142_s6, %s142_s6 }
  0x2b   :  { %v60_v9 = vsub.f32 1.0, %v56_v6  ;;  %v61_v11 = vsub.f32 1.0, %v57_v8  ;;  %vm105_vm5 = vcmp.gt.f32.partialorder %v299_v3, -0.9800666  ;;  %v159_v34 = vadd.f32 -0.039733864, %v299_v3  ;;  %p220_p2 = scmp.ne.s32.totalorder %s142_s6, %s219_s7  ;;  %p225_p4 = scmp.lt.s32.totalorder %s219_s7, %s219_s7 }
  0x2c   :  { %v62_v13 = vsub.f32 1.0, %v58_v10  ;;  %v63_v15 = vsub.f32 1.0, %v59_v14  ;;  %v94_v35 = vmul.f32 0.9800666, %v301_v5  ;;  %vm106_vm10 = vcmp.gt.f32.partialorder %v301_v5, -0.9800666 }
  0x2d   :  { %167 = vrsqrt.f32 %v60_v9  ;;  %vm66_vm0 = vcmp.eq.f32.partialorder %v60_v9, inf  ;;  %v69_v17 = vand.u32 2147483648, %v60_v9  ;;  %vm68_vm1 = vcmp.eq.f32.partialorder %v60_v9, 0.0  ;;  %v47_v6 = vld [vmem:[#allocation5 + $0x18] sm:$0xff]  ;;  %p226_p5 = por %p225_p4, %p224_p3 }
  0x2e   :  { %169 = vrsqrt.f32 %v61_v11  ;;  %vm73_vm2 = vcmp.eq.f32.partialorder %v61_v11, inf  ;;  %v76_v20 = vand.u32 2147483648, %v61_v11  ;;  %vm75_vm4 = vcmp.eq.f32.partialorder %v61_v11, 0.0 }
  0x2f   :  { %171 = vrsqrt.f32 %v62_v13  ;;  %vm80_vm6 = vcmp.eq.f32.partialorder %v62_v13, inf  ;;  %v83_v29 = vand.u32 2147483648, %v62_v13  ;;  %vm82_vm7 = vcmp.eq.f32.partialorder %v62_v13, 0.0  ;;  %p227_p6 = pnand %p226_p5, %p220_p2 }
  0x30   :  { %173 = vrsqrt.f32 %v63_v15  ;;  %vm87_vm8 = vcmp.eq.f32.partialorder %v63_v15, inf  ;;  %v90_v39 = vand.u32 2147483648, %v63_v15  ;;  %vm89_vm9 = vcmp.eq.f32.partialorder %v63_v15, 0.0 }
  0x31   :  { %v160_v46 = vadd.f32 -0.039733864, %v301_v5  ;;  %v95_v51 = vmul.f32 0.9800666, %v309_v12  ;;  %v161_v57 = vadd.f32 -0.039733864, %v309_v12 }
  0x32   :  { %vm107_vm11 = vcmp.gt.f32.partialorder %v309_v12, -0.9800666 }
  0x37   :  { %v168_v16 = vpop.eup %167 }
  0x38   :  { %v170_v18 = vpop.eup %169  ;;  %v65_v19 = vmul.f32 %v168_v16, %v60_v9 }
  0x39   :  { %v72_v22 = vmul.f32 %v170_v18, %v61_v11  ;;  %v172_v26 = vpop.eup %171 }
  0x3a   :  { %v67_v23 = vsel %vm66_vm0, %v60_v9, %v65_v19  ;;  %v79_v32 = vmul.f32 %v172_v26, %v62_v13  ;;  %v174_v36 = vpop.eup %173 }
  0x3b   :  { %v70_v27 = vsel %vm68_vm1, %v69_v17, %v67_v23  ;;  %v74_v28 = vsel %vm73_vm2, %v61_v11, %v72_v22  ;;  %v86_v43 = vmul.f32 %v174_v36, %v63_v15 }
  0x3c   :  { %v96_v30 = vmul.f32 0.19866933, %v70_v27  ;;  %v77_v31 = vsel %vm75_vm4, %v76_v20, %v74_v28  ;;  %v81_v38 = vsel %vm80_vm6, %v62_v13, %v79_v32 }
  0x3d   :  { %v97_v33 = vmul.f32 0.19866933, %v77_v31  ;;  %v84_v42 = vsel %vm82_vm7, %v83_v29, %v81_v38  ;;  %v88_v50 = vsel %vm87_vm8, %v63_v15, %v86_v43 }
  0x3e   :  { %v100_v37 = vsub.f32 %v92_v21, %v96_v30  ;;  %v98_v45 = vmul.f32 0.19866933, %v84_v42  ;;  %v91_v54 = vsel %vm89_vm9, %v90_v39, %v88_v50 }
  0x3f   :  { %v101_v41 = vsub.f32 %v93_v25, %v97_v33  ;;  %v99_v56 = vmul.f32 0.19866933, %v91_v54 }
  0x40   :  { %v112_v44 = vsel %vm104_vm3, %v100_v37, %v158_v24  ;;  %v102_v53 = vsub.f32 %v94_v35, %v98_v45 }
  0x41   :  { %v116_v47 = vsub.f32 %v112_v44, %v297_v2  ;;  %v113_v49 = vsel %vm105_vm5, %v101_v41, %v159_v34  ;;  %v103_v63 = vsub.f32 %v95_v51, %v99_v56 }
  0x42   :  { %v117_v52 = vsub.f32 %v113_v49, %v299_v3  ;;  %v114_v60 = vsel %vm106_vm10, %v102_v53, %v160_v46 }
  0x43   :  { %v120_v55 = vmul.f32 %v116_v47, %v44_v40  ;;  %v118_v62 = vsub.f32 %v114_v60, %v301_v5  ;;  %v115_v7 = vsel %vm107_vm11, %v103_v63, %v161_v57 }
  0x44   :  { %v121_v58 = vmul.f32 %v117_v52, %v45_v48  ;;  %v119_v9 = vsub.f32 %v115_v7, %v309_v12 }
  0x45   :  { %v124_v61 = vadd.f32 %v297_v2, %v120_v55  ;;  %v122_v4 = vmul.f32 %v118_v62, %v46_v59 }
  0x46   :  { %v125_v0 = vadd.f32 %v299_v3, %v121_v58  ;;  %v123_v11 = vmul.f32 %v119_v9, %v47_v6 }
  0x47   :  { %v128_v1 = vmul.f32 30.0, %v124_v61  ;;  %v126_v10 = vadd.f32 %v301_v5, %v122_v4 }
  0x48   :  { %v129_v8 = vmul.f32 30.0, %v125_v0  ;;  %v127_v2 = vadd.f32 %v309_v12, %v123_v11 }
  0x49   :  { %132 = vst [vmem:[#allocation7] sm:$0xff] %v128_v1  ;;  %v130_v13 = vmul.f32 30.0, %v126_v10 }
  0x4a   :  { %133 = vst [vmem:[#allocation7 + $0x8] sm:$0xff] %v129_v8  ;;  %v131_v14 = vmul.f32 30.0, %v127_v2 }
  0x4b   :  { %134 = vst [vmem:[#allocation7 + $0x10] sm:$0xff] %v130_v13 }
  0x4c   :  { %135 = vst [vmem:[#allocation7 + $0x18] sm:$0xff] %v131_v14 }
  0x4d   :  { %230 = shalt.err (!%p227_p6)
}
  0x4e   :  { %s231_s10 = scalar_lea.hbm %s354_s2, 512 }
  0x4f   :  { %p232_p7 = scmp.ne.s32.totalorder %s354_s2, %s231_s10  ;;  %p235_p8 = scmp.lt.u32.totalorder %s231_s10, %s354_s2 }
  0x51   :  { %p237_p9 = pnand %p235_p8, %p232_p7 }
  0x53   :  { %240 = shalt.err (!%p237_p9)
}
  0x54   :  { %147 = dma.vmem_to_hbm [thread:$0]  %s142_s6, 512, %s354_s2, [#allocation4], %s248_s19, %s248_s19, %s249_s20  }
  0x55   :  { %245 = dma.done.wait [#allocation4], 512  }
  0x56   :  { %246 = vsyncadd [#allocation4], 4294966784 }
  0x57   :  { %151 = vsyncpa [#allocation3], 1 }
  0x58   :  { %152 = vsyncpa [#allocation6], 1 }
  0x59   :  { %153 = vsyncpa [#allocation4], 1 }

</bundles_post_ra>
